<compile_context>
chip_gen: v6e
topology: v6e:2x2x1
jax: 0.10.0
libtpu: 0.0.40
codegen_flags: <defaults>
</compile_context>

<pallas_src>
import functools

import jax
import jax.numpy as jnp
from jax.experimental import pallas as pl
from jax.experimental.pallas import tpu as pltpu  # noqa: F401  (TPU backend)


# ----------------------------------------------------------------------------
# In-kernel helpers (traced inline; everything stays VMEM-resident)
# ----------------------------------------------------------------------------
def _embed_onehot(ids, vocab):
    """Token-id gather expressed as a one-hot matmul operand.

    ids: (N, 1) int32  ->  (N, vocab) f32 one-hot (MXU-friendly, no HBM trip).
    """
    n = ids.shape[0]
    iota = jax.lax.broadcasted_iota(jnp.int32, (n, vocab), 1)
    return (iota == ids).astype(jnp.float32)


def _encode(onehot, emb, w, b):
    """UniTextEncoder equivalent: embed -> dense -> tanh (rows flattened)."""
    x = jnp.dot(onehot, emb, preferred_element_type=jnp.float32)       # (N, D)
    y = jnp.dot(x, w, preferred_element_type=jnp.float32) + b          # (N, D)
    return jnp.tanh(y)


# ----------------------------------------------------------------------------
# Pallas kernels (one fused kernel per forward path)
# ----------------------------------------------------------------------------
def _attention_kernel(B, S,
                      ids_ref, gemb_ref, gw_ref, gb_ref,
                      semb_ref, sw_ref, sb_ref,
                      wq_ref, wk_ref, wv_ref, wo_ref, o_ref):
    """'both' + 'attention': embed -> two encoders -> cross attention."""
    V, D = gemb_ref.shape
    N = B * S

    onehot = _embed_onehot(ids_ref[...], V)                             # (N, V)
    enc_g = _encode(onehot, gemb_ref[...], gw_ref[...], gb_ref[...])    # (N, D)
    enc_s = _encode(onehot, semb_ref[...], sw_ref[...], sb_ref[...])    # (N, D)

    # FusionModel: Q from sentiment branch, K/V from general branch.
    q = jnp.dot(enc_s, wq_ref[...], preferred_element_type=jnp.float32)
    k = jnp.dot(enc_g, wk_ref[...], preferred_element_type=jnp.float32)
    v = jnp.dot(enc_g, wv_ref[...], preferred_element_type=jnp.float32)

    q3 = q.reshape(B, S, D)
    k3 = k.reshape(B, S, D)
    v3 = v.reshape(B, S, D)

    scale = 1.0 / jnp.sqrt(jnp.float32(D))
    # einsum contracts the last dims directly — no k.T / XLU transpose.
    scores = jnp.einsum("bqd,bkd->bqk", q3, k3,
                        preferred_element_type=jnp.float32) * scale     # (B,S,S)
    m = scores.max(axis=-1, keepdims=True)
    p = jnp.exp(scores - m)
    p = p * pl.reciprocal(p.sum(axis=-1, keepdims=True), approx=True)
    ctx = jnp.einsum("bqk,bkd->bqd", p, v3,
                     preferred_element_type=jnp.float32)                # (B,S,D)

    out = jnp.dot(ctx.reshape(N, D), wo_ref[...],
                  preferred_element_type=jnp.float32) + enc_s           # residual
    o_ref[...] = out.astype(o_ref.dtype)


def _addition_kernel(B, S,
                     ids_ref, gemb_ref, gw_ref, gb_ref,
                     semb_ref, sw_ref, sb_ref, o_ref):
    """'both' + 'addition': both encoders, written straight into concat slab."""
    V, D = gemb_ref.shape
    onehot = _embed_onehot(ids_ref[...], V)
    enc_g = _encode(onehot, gemb_ref[...], gw_ref[...], gb_ref[...])
    enc_s = _encode(onehot, semb_ref[...], sw_ref[...], sb_ref[...])
    # torch.cat(dim=1): [B, 2S, D], general first then sentiment.
    o_ref[:, 0:S, :] = enc_g.reshape(B, S, D).astype(o_ref.dtype)
    o_ref[:, S:2 * S, :] = enc_s.reshape(B, S, D).astype(o_ref.dtype)


def _single_kernel(ids_ref, emb_ref, w_ref, b_ref, o_ref):
    """'single' branch: one encoder (general or sentiment)."""
    V, _ = emb_ref.shape
    onehot = _embed_onehot(ids_ref[...], V)
    o_ref[...] = _encode(onehot, emb_ref[...], w_ref[...],
                         b_ref[...]).astype(o_ref.dtype)


# ----------------------------------------------------------------------------
# Pallas wrappers (single grid step; all operands fit comfortably in VMEM)
# ----------------------------------------------------------------------------
def _prep_ids(text):
    B, S = text.shape
    return text.astype(jnp.int32).reshape(B * S, 1), B, S


def _attention_forward(text, p):
    ids, B, S = _prep_ids(text)
    D = p["gen_w"].shape[0]
    out = pl.pallas_call(
        functools.partial(_attention_kernel, B, S),
        out_shape=jax.ShapeDtypeStruct((B * S, D), jnp.float32),
    )(ids,
      p["gen_emb"], p["gen_w"], p["gen_b"],
      p["sen_emb"], p["sen_w"], p["sen_b"],
      p["wq"], p["wk"], p["wv"], p["wo"])
    return out.reshape(B, S, D)


def _addition_forward(text, p):
    ids, B, S = _prep_ids(text)
    D = p["gen_w"].shape[0]
    return pl.pallas_call(
        functools.partial(_addition_kernel, B, S),
        out_shape=jax.ShapeDtypeStruct((B, 2 * S, D), jnp.float32),
    )(ids,
      p["gen_emb"], p["gen_w"], p["gen_b"],
      p["sen_emb"], p["sen_w"], p["sen_b"])


def _single_forward(text, emb, w, b):
    ids, B, S = _prep_ids(text)
    D = w.shape[0]
    out = pl.pallas_call(
        _single_kernel,
        out_shape=jax.ShapeDtypeStruct((B * S, D), jnp.float32),
    )(ids, emb, w, b)
    return out.reshape(B, S, D)


# ----------------------------------------------------------------------------
# Model (mirrors SentiTextualModel.forward dispatch)
# ----------------------------------------------------------------------------
class SentiTextualModelPallas:
    def __init__(self, model_type=("both", "attention"),
                 vocab=64, hidden=128, seed=0):
        self.model_type = model_type
        self.hidden = hidden
        key = jax.random.PRNGKey(seed)
        ks = jax.random.split(key, 10)
        s = 0.02
        self.params = {
            # general branch
            "gen_emb": s * jax.random.normal(ks[0], (vocab, hidden), jnp.float32),
            "gen_w":   s * jax.random.normal(ks[1], (hidden, hidden), jnp.float32),
            "gen_b":   s * jax.random.normal(ks[2], (1, hidden), jnp.float32),
            # sentiment branch
            "sen_emb": s * jax.random.normal(ks[3], (vocab, hidden), jnp.float32),
            "sen_w":   s * jax.random.normal(ks[4], (hidden, hidden), jnp.float32),
            "sen_b":   s * jax.random.normal(ks[5], (1, hidden), jnp.float32),
            # fusion (cross-attention)
            "wq": s * jax.random.normal(ks[6], (hidden, hidden), jnp.float32),
            "wk": s * jax.random.normal(ks[7], (hidden, hidden), jnp.float32),
            "wv": s * jax.random.normal(ks[8], (hidden, hidden), jnp.float32),
            "wo": s * jax.random.normal(ks[9], (hidden, hidden), jnp.float32),
        }

    # ---- forward dispatch (matches the PyTorch module) ----------------------
    def forward(self, text):
        if self.model_type[0] == "single":
            return self.forward_single_branch(text, self.model_type[1])
        assert self.model_type[0] == "both"
        if self.model_type[1] == "attention":
            return self.forward_self_attention(text)
        elif self.model_type[1] == "addition":
            return self.forward_addition(text)
        raise TypeError("Textual model type [1] undefined.")

    def forward_single_branch(self, text, type_):
        p = self.params
        if type_ == "sentiment":
            return _single_forward(text, p["sen_emb"], p["sen_w"], p["sen_b"])
        elif type_ == "general":
            return _single_forward(text, p["gen_emb"], p["gen_w"], p["gen_b"])
        raise TypeError("Textual model type [1] undefined.")

    def forward_self_attention(self, text):
        return _attention_forward(text, self.params)

    def forward_addition(self, text):
        return _addition_forward(text, self.params)

    __call__ = forward


# ----------------------------------------------------------------------------
if __name__ == "__main__":
    B, S, D, V = 2, 8, 128, 64
    key = jax.random.PRNGKey(0)
    text = jax.random.randint(key, (B, S), 0, V, dtype=jnp.int32)

    # both + attention : fully fused embed -> encoders -> cross-attention
    model = SentiTextualModelPallas(model_type=("both", "attention"),
                                    vocab=V, hidden=D, seed=0)
    out_attn = jax.block_until_ready(model(text))
    assert out_attn.shape == (B, S, D)

    # both + addition : concat along sequence dim, written in-kernel
    model.model_type = ("both", "addition")
    out_add = jax.block_until_ready(model(text))
    assert out_add.shape == (B, 2 * S, D)

    # single + general
    model.model_type = ("single", "general")
    out_gen = jax.block_until_ready(model(text))
    assert out_gen.shape == (B, S, D)

    # single + sentiment
    model.model_type = ("single", "sentiment")
    out_sen = jax.block_until_ready(model(text))
    assert out_sen.shape == (B, S, D)

    print("KERNEL_OK")
</pallas_src>

<mosaic_0001>
module attributes {stable_mosaic.version = 11 : i64} {
  func.func @_attention_kernel(%arg0: memref<16x1xi32, #tpu.memory_space<vmem>>, %arg1: memref<64x128xf32, #tpu.memory_space<vmem>>, %arg2: memref<128x128xf32, #tpu.memory_space<vmem>>, %arg3: memref<1x128xf32, #tpu.memory_space<vmem>>, %arg4: memref<64x128xf32, #tpu.memory_space<vmem>>, %arg5: memref<128x128xf32, #tpu.memory_space<vmem>>, %arg6: memref<1x128xf32, #tpu.memory_space<vmem>>, %arg7: memref<128x128xf32, #tpu.memory_space<vmem>>, %arg8: memref<128x128xf32, #tpu.memory_space<vmem>>, %arg9: memref<128x128xf32, #tpu.memory_space<vmem>>, %arg10: memref<128x128xf32, #tpu.memory_space<vmem>>, %arg11: memref<16x128xf32, #tpu.memory_space<vmem>>) attributes {dimension_semantics = [], scalar_prefetch = 0 : i64, scratch_operands = 0 : i64, tpu.core_type = #tpu.core_type<tc>} {
    %c0 = arith.constant 0 : index
    %c0_0 = arith.constant 0 : index
    %0 = vector.load %arg0[%c0, %c0_0] : memref<16x1xi32, #tpu.memory_space<vmem>>, vector<16x1xi32>
    %1 = tpu.iota {dimensions = array<i32: 1>} : vector<16x64xi32>
    %2 = vector.broadcast %0 : vector<16x1xi32> to vector<16x64xi32>
    %3 = arith.cmpi eq, %1, %2 : vector<16x64xi32>
    %4 = arith.extui %3 : vector<16x64xi1> to vector<16x64xi32>
    %5 = arith.sitofp %4 : vector<16x64xi32> to vector<16x64xf32>
    %c0_1 = arith.constant 0 : index
    %c0_2 = arith.constant 0 : index
    %6 = vector.load %arg1[%c0_1, %c0_2] : memref<64x128xf32, #tpu.memory_space<vmem>>, vector<64x128xf32>
    %c0_3 = arith.constant 0 : index
    %c0_4 = arith.constant 0 : index
    %7 = vector.load %arg2[%c0_3, %c0_4] : memref<128x128xf32, #tpu.memory_space<vmem>>, vector<128x128xf32>
    %c0_5 = arith.constant 0 : index
    %c0_6 = arith.constant 0 : index
    %8 = vector.load %arg3[%c0_5, %c0_6] : memref<1x128xf32, #tpu.memory_space<vmem>>, vector<1x128xf32>
    %cst = arith.constant dense<0.000000e+00> : vector<16x128xf32>
    %9 = tpu.matmul %5, %6, %cst {dimension_numbers = #tpu.dot_dimension_numbers<[1], [0], [0], [1], [0, 0, 1, 1], [], []>} : vector<16x64xf32>, vector<64x128xf32>, vector<16x128xf32> -> vector<16x128xf32>
    %cst_7 = arith.constant dense<0.000000e+00> : vector<16x128xf32>
    %10 = tpu.matmul %9, %7, %cst_7 {dimension_numbers = #tpu.dot_dimension_numbers<[1], [0], [0], [1], [0, 0, 1, 1], [], []>} : vector<16x128xf32>, vector<128x128xf32>, vector<16x128xf32> -> vector<16x128xf32>
    %11 = vector.broadcast %8 : vector<1x128xf32> to vector<16x128xf32>
    %12 = arith.addf %10, %11 : vector<16x128xf32>
    %13 = math.tanh %12 : vector<16x128xf32>
    %c0_8 = arith.constant 0 : index
    %c0_9 = arith.constant 0 : index
    %14 = vector.load %arg4[%c0_8, %c0_9] : memref<64x128xf32, #tpu.memory_space<vmem>>, vector<64x128xf32>
    %c0_10 = arith.constant 0 : index
    %c0_11 = arith.constant 0 : index
    %15 = vector.load %arg5[%c0_10, %c0_11] : memref<128x128xf32, #tpu.memory_space<vmem>>, vector<128x128xf32>
    %c0_12 = arith.constant 0 : index
    %c0_13 = arith.constant 0 : index
    %16 = vector.load %arg6[%c0_12, %c0_13] : memref<1x128xf32, #tpu.memory_space<vmem>>, vector<1x128xf32>
    %cst_14 = arith.constant dense<0.000000e+00> : vector<16x128xf32>
    %17 = tpu.matmul %5, %14, %cst_14 {dimension_numbers = #tpu.dot_dimension_numbers<[1], [0], [0], [1], [0, 0, 1, 1], [], []>} : vector<16x64xf32>, vector<64x128xf32>, vector<16x128xf32> -> vector<16x128xf32>
    %cst_15 = arith.constant dense<0.000000e+00> : vector<16x128xf32>
    %18 = tpu.matmul %17, %15, %cst_15 {dimension_numbers = #tpu.dot_dimension_numbers<[1], [0], [0], [1], [0, 0, 1, 1], [], []>} : vector<16x128xf32>, vector<128x128xf32>, vector<16x128xf32> -> vector<16x128xf32>
    %19 = vector.broadcast %16 : vector<1x128xf32> to vector<16x128xf32>
    %20 = arith.addf %18, %19 : vector<16x128xf32>
    %21 = math.tanh %20 : vector<16x128xf32>
    %c0_16 = arith.constant 0 : index
    %c0_17 = arith.constant 0 : index
    %22 = vector.load %arg7[%c0_16, %c0_17] : memref<128x128xf32, #tpu.memory_space<vmem>>, vector<128x128xf32>
    %cst_18 = arith.constant dense<0.000000e+00> : vector<16x128xf32>
    %23 = tpu.matmul %21, %22, %cst_18 {dimension_numbers = #tpu.dot_dimension_numbers<[1], [0], [0], [1], [0, 0, 1, 1], [], []>} : vector<16x128xf32>, vector<128x128xf32>, vector<16x128xf32> -> vector<16x128xf32>
    %c0_19 = arith.constant 0 : index
    %c0_20 = arith.constant 0 : index
    %24 = vector.load %arg8[%c0_19, %c0_20] : memref<128x128xf32, #tpu.memory_space<vmem>>, vector<128x128xf32>
    %cst_21 = arith.constant dense<0.000000e+00> : vector<16x128xf32>
    %25 = tpu.matmul %13, %24, %cst_21 {dimension_numbers = #tpu.dot_dimension_numbers<[1], [0], [0], [1], [0, 0, 1, 1], [], []>} : vector<16x128xf32>, vector<128x128xf32>, vector<16x128xf32> -> vector<16x128xf32>
    %c0_22 = arith.constant 0 : index
    %c0_23 = arith.constant 0 : index
    %26 = vector.load %arg9[%c0_22, %c0_23] : memref<128x128xf32, #tpu.memory_space<vmem>>, vector<128x128xf32>
    %cst_24 = arith.constant dense<0.000000e+00> : vector<16x128xf32>
    %27 = tpu.matmul %13, %26, %cst_24 {dimension_numbers = #tpu.dot_dimension_numbers<[1], [0], [0], [1], [0, 0, 1, 1], [], []>} : vector<16x128xf32>, vector<128x128xf32>, vector<16x128xf32> -> vector<16x128xf32>
    %28 = vector.shape_cast %23 : vector<16x128xf32> to vector<2x8x128xf32>
    %29 = vector.shape_cast %25 : vector<16x128xf32> to vector<2x8x128xf32>
    %30 = vector.shape_cast %27 : vector<16x128xf32> to vector<2x8x128xf32>
    %cst_25 = arith.constant 1.280000e+02 : f32
    %31 = math.sqrt %cst_25 : f32
    %cst_26 = arith.constant 1.000000e+00 : f32
    %32 = arith.divf %cst_26, %31 : f32
    "tpu.trace_start"() <{level = 10 : i32, message = "bqd,bkd->bqk"}> : () -> ()
    %cst_27 = arith.constant dense<0.000000e+00> : vector<2x8x8xf32>
    %33 = tpu.matmul %28, %29, %cst_27 {dimension_numbers = #tpu.dot_dimension_numbers<[2], [2], [1], [1], [0, 0, 0, 1, 1, 1], [0], [0]>} : vector<2x8x128xf32>, vector<2x8x128xf32>, vector<2x8x8xf32> -> vector<2x8x8xf32>
    "tpu.trace_stop"() : () -> ()
    %34 = vector.broadcast %32 : f32 to vector<2x8x8xf32>
    %35 = arith.mulf %33, %34 : vector<2x8x8xf32>
    %cst_28 = arith.constant dense<0xFF800000> : vector<2x8xf32>
    %36 = vector.multi_reduction <maximumf>, %35, %cst_28 [2] : vector<2x8x8xf32> to vector<2x8xf32>
    %37 = vector.shape_cast %36 : vector<2x8xf32> to vector<2x8x1xf32>
    %38 = vector.broadcast %37 : vector<2x8x1xf32> to vector<2x8x8xf32>
    %39 = arith.subf %35, %38 : vector<2x8x8xf32>
    %40 = math.exp %39 : vector<2x8x8xf32>
    %cst_29 = arith.constant dense<0.000000e+00> : vector<2x8xf32>
    %41 = vector.multi_reduction <add>, %40, %cst_29 [2] : vector<2x8x8xf32> to vector<2x8xf32>
    %42 = vector.shape_cast %41 : vector<2x8xf32> to vector<2x8x1xf32>
    %43 = tpu.reciprocal %42 {approx = true} : vector<2x8x1xf32> -> vector<2x8x1xf32>
    %44 = vector.broadcast %43 : vector<2x8x1xf32> to vector<2x8x8xf32>
    %45 = arith.mulf %40, %44 : vector<2x8x8xf32>
    "tpu.trace_start"() <{level = 10 : i32, message = "bqk,bkd->bqd"}> : () -> ()
    %cst_30 = arith.constant dense<0.000000e+00> : vector<2x8x128xf32>
    %46 = tpu.matmul %45, %30, %cst_30 {dimension_numbers = #tpu.dot_dimension_numbers<[2], [1], [1], [2], [0, 0, 0, 1, 1, 2], [0], [0]>} : vector<2x8x8xf32>, vector<2x8x128xf32>, vector<2x8x128xf32> -> vector<2x8x128xf32>
    "tpu.trace_stop"() : () -> ()
    %47 = vector.shape_cast %46 : vector<2x8x128xf32> to vector<16x128xf32>
    %c0_31 = arith.constant 0 : index
    %c0_32 = arith.constant 0 : index
    %48 = vector.load %arg10[%c0_31, %c0_32] : memref<128x128xf32, #tpu.memory_space<vmem>>, vector<128x128xf32>
    %cst_33 = arith.constant dense<0.000000e+00> : vector<16x128xf32>
    %49 = tpu.matmul %47, %48, %cst_33 {dimension_numbers = #tpu.dot_dimension_numbers<[1], [0], [0], [1], [0, 0, 1, 1], [], []>} : vector<16x128xf32>, vector<128x128xf32>, vector<16x128xf32> -> vector<16x128xf32>
    %50 = arith.addf %49, %21 : vector<16x128xf32>
    %c0_34 = arith.constant 0 : index
    %c0_35 = arith.constant 0 : index
    %51 = vector.load %arg11[%c0_34, %c0_35] : memref<16x128xf32, #tpu.memory_space<vmem>>, vector<16x128xf32>
    tpu.vector_store %arg11[%c0_34, %c0_35], %50 {strides = array<i32>} : memref<16x128xf32, #tpu.memory_space<vmem>>, vector<16x128xf32>,
    return
  }
}

</mosaic_0001>

<bundles_post_ra>
// kernel: tpu_custom_call.1
= control target key start
LH: loop header
LB: loop body
LE: loop exit
PB: predicated region body
PF: predicated region fallthrough
CT: control target
= control target key end

     0   :  { %16 = vsyncpa [#allocation3], 0  ;;  %s2036_s0 = inlined_call_operand.vmem [shape: s32[16,1], index: 0, kind: input, shape index: {}]   ;;  %s2037_s1 = inlined_call_operand.hbm [shape: f32[64,128], index: 1, kind: input, shape index: {}]   ;;  %s2038_s2 = inlined_call_operand.hbm [shape: f32[128,128], index: 2, kind: input, shape index: {}]   ;;  %s2039_s3 = inlined_call_operand.vmem [shape: f32[1,128], index: 3, kind: input, shape index: {}]   ;;  %s2040_s4 = inlined_call_operand.hbm [shape: f32[64,128], index: 4, kind: input, shape index: {}]   ;;  %s2041_s5 = inlined_call_operand.hbm [shape: f32[128,128], index: 5, kind: input, shape index: {}]   ;;  %s2042_s6 = inlined_call_operand.vmem [shape: f32[1,128], index: 6, kind: input, shape index: {}]   ;;  %s2043_s7 = inlined_call_operand.hbm [shape: f32[128,128], index: 7, kind: input, shape index: {}]   ;;  %s2044_s8 = inlined_call_operand.hbm [shape: f32[128,128], index: 8, kind: input, shape index: {}]   ;;  %s2045_s9 = inlined_call_operand.hbm [shape: f32[128,128], index: 9, kind: input, shape index: {}]   ;;  %s2046_s10 = inlined_call_operand.hbm [shape: f32[128,128], index: 10, kind: input, shape index: {}]   ;;  %s2047_s11 = inlined_call_operand.hbm [shape: f32[16,128], index: 11, kind: output, shape index: {}]  }
   0x1   :  { %17 = vsyncpa [#allocation6], 0 }
   0x2   :  { %18 = vsyncpa [#allocation9], 0 }
   0x3   :  { %19 = vsyncpa [#allocation12], 0 }
   0x4   :  { %20 = vsyncpa [#allocation15], 0 }
   0x5   :  { %21 = vsyncpa [#allocation4], 0  ;;  %s1872_s17 = smov [#allocation5]   ;;  %s1873_s19 = smov [#allocation8]  }
   0x6   :  { %s41_s18 = sshll.u32 %s1872_s17, 4  ;;  %s67_s20 = sshll.u32 %s1873_s19, 4  ;;  %s42_s18 = int_to_ptr.vmem [resolvable:$true] %s41_s18  ;;  %s68_s20 = int_to_ptr.vmem [resolvable:$true] %s67_s20 }
   0x7   :  { %s1688_s21 = scalar_lea.vmem %s42_s18, 2048  ;;  %p1693_p1 = scmp.lt.s32.totalorder %s42_s18, %s42_s18 }
   0x8   :  { %p1689_p0 = scmp.ne.s32.totalorder %s42_s18, %s1688_s21  ;;  %p1694_p2 = scmp.lt.s32.totalorder %s1688_s21, %s1688_s21 }
   0xa   :  { %p1695_p3 = por %p1694_p2, %p1693_p1 }
   0xc   :  { %p1696_p4 = pnand %p1695_p3, %p1689_p0 }
   0xe   :  { %1699 = shalt.err (!%p1696_p4)
}
   0xf   :  { %s1874_s22 = smov 128   ;;  %s1875_s23 = smov 8  }
  0x10   :  { %47 = dma.hbm_to_vmem [thread:$0]  %s2038_s2, 2048, %s42_s18, [#allocation6], %s1874_s22, %s1874_s22, %s1875_s23  }
  0x11   :  { %s1708_s26 = scalar_lea.vmem %s68_s20, 2048  ;;  %p1713_p6 = scmp.lt.s32.totalorder %s68_s20, %s68_s20 }
  0x12   :  { %p1709_p5 = scmp.ne.s32.totalorder %s68_s20, %s1708_s26  ;;  %p1714_p7 = scmp.lt.s32.totalorder %s1708_s26, %s1708_s26 }
  0x14   :  { %p1715_p8 = por %p1714_p7, %p1713_p6 }
  0x16   :  { %p1716_p9 = pnand %p1715_p8, %p1709_p5 }
  0x18   :  { %1719 = shalt.err (!%p1716_p9)
}
  0x19   :  { %73 = dma.hbm_to_vmem [thread:$0]  %s2041_s5, 2048, %s68_s20, [#allocation9], %s1874_s22, %s1874_s22, %s1875_s23  }
  0x1a   :  { %s1876_s29 = smov [#allocation11]   ;;  %s1877_s12 = smov [#allocation2]  }
  0x1b   :  { %s93_s30 = sshll.u32 %s1876_s29, 4  ;;  %s29_s13 = sshll.u32 %s1877_s12, 4  ;;  %s94_s30 = int_to_ptr.vmem [resolvable:$true] %s93_s30  ;;  %s30_s13 = int_to_ptr.vmem [resolvable:$true] %s29_s13 }
  0x1c   :  { %s1728_s2 = scalar_lea.vmem %s94_s30, 2048  ;;  %p1733_p11 = scmp.lt.s32.totalorder %s94_s30, %s94_s30 }
  0x1d   :  { %p1729_p10 = scmp.ne.s32.totalorder %s94_s30, %s1728_s2  ;;  %p1734_p12 = scmp.lt.s32.totalorder %s1728_s2, %s1728_s2 }
  0x1f   :  { %p1735_p13 = por %p1734_p12, %p1733_p11 }
  0x21   :  { %p1736_p0 = pnand %p1735_p13, %p1729_p10 }
  0x23   :  { %1739 = shalt.err (!%p1736_p0)
}
  0x24   :  { %99 = dma.hbm_to_vmem [thread:$0]  %s2044_s8, 2048, %s94_s30, [#allocation12], %s1874_s22, %s1874_s22, %s1875_s23  }
  0x25   :  { %s1748_s5 = scalar_lea.vmem %s30_s13, 1024  ;;  %p1753_p2 = scmp.lt.s32.totalorder %s30_s13, %s30_s13 }
  0x26   :  { %p1749_p1 = scmp.ne.s32.totalorder %s30_s13, %s1748_s5  ;;  %p1754_p3 = scmp.lt.s32.totalorder %s1748_s5, %s1748_s5 }
  0x28   :  { %p1755_p4 = por %p1754_p3, %p1753_p2 }
  0x2a   :  { %p1756_p5 = pnand %p1755_p4, %p1749_p1 }
  0x2c   :  { %1759 = shalt.err (!%p1756_p5)
}
  0x2d   :  { %35 = dma.hbm_to_vmem [thread:$0]  %s2037_s1, 1024, %s30_s13, [#allocation3], %s1874_s22, %s1874_s22, %s1875_s23  }
  0x2e   :  { %s1878_s18 = smov [#allocation7]   ;;  %s1879_s20 = smov [#allocation10]  }
  0x2f   :  { %s55_s19 = sshll.u32 %s1878_s18, 4  ;;  %s81_s21 = sshll.u32 %s1879_s20, 4  ;;  %s56_s19 = int_to_ptr.vmem [resolvable:$true] %s55_s19  ;;  %s82_s21 = int_to_ptr.vmem [resolvable:$true] %s81_s21 }
  0x30   :  { %s1768_s8 = scalar_lea.vmem %s56_s19, 1024  ;;  %p1773_p7 = scmp.lt.s32.totalorder %s56_s19, %s56_s19 }
  0x31   :  { %p1769_p6 = scmp.ne.s32.totalorder %s56_s19, %s1768_s8  ;;  %p1774_p8 = scmp.lt.s32.totalorder %s1768_s8, %s1768_s8 }
  0x33   :  { %p1775_p9 = por %p1774_p8, %p1773_p7 }
  0x35   :  { %p1776_p10 = pnand %p1775_p9, %p1769_p6 }
  0x37   :  { %1779 = shalt.err (!%p1776_p10)
}
  0x38   :  { %61 = dma.hbm_to_vmem [thread:$0]  %s2040_s4, 1024, %s56_s19, [#allocation6], %s1874_s22, %s1874_s22, %s1875_s23  }
  0x39   :  { %s1788_s1 = scalar_lea.vmem %s82_s21, 2048  ;;  %p1793_p12 = scmp.lt.s32.totalorder %s82_s21, %s82_s21 }
  0x3a   :  { %p1789_p11 = scmp.ne.s32.totalorder %s82_s21, %s1788_s1  ;;  %p1794_p13 = scmp.lt.s32.totalorder %s1788_s1, %s1788_s1 }
  0x3c   :  { %p1795_p0 = por %p1794_p13, %p1793_p12 }
  0x3e   :  { %p1796_p1 = pnand %p1795_p0, %p1789_p11 }
  0x40   :  { %1799 = shalt.err (!%p1796_p1)
}
  0x41   :  { %87 = dma.hbm_to_vmem [thread:$0]  %s2043_s7, 2048, %s82_s21, [#allocation9], %s1874_s22, %s1874_s22, %s1875_s23  }
  0x42   :  { %s1880_s28 = smov [#allocation13]   ;;  %s1881_s30 = smov [#allocation14]  }
  0x43   :  { %s105_s29 = sshll.u32 %s1880_s28, 4  ;;  %s117_s12 = sshll.u32 %s1881_s30, 4  ;;  %s106_s29 = int_to_ptr.vmem [resolvable:$true] %s105_s29  ;;  %s118_s12 = int_to_ptr.vmem [resolvable:$true] %s117_s12 }
  0x44   :  { %s1808_s4 = scalar_lea.vmem %s106_s29, 2048  ;;  %p1813_p3 = scmp.lt.s32.totalorder %s106_s29, %s106_s29 }
  0x45   :  { %p1809_p2 = scmp.ne.s32.totalorder %s106_s29, %s1808_s4  ;;  %p1814_p4 = scmp.lt.s32.totalorder %s1808_s4, %s1808_s4 }
  0x47   :  { %p1815_p5 = por %p1814_p4, %p1813_p3 }
  0x49   :  { %p1816_p6 = pnand %p1815_p5, %p1809_p2 }
  0x4b   :  { %1819 = shalt.err (!%p1816_p6)
}
  0x4c   :  { %111 = dma.hbm_to_vmem [thread:$0]  %s2045_s9, 2048, %s106_s29, [#allocation12], %s1874_s22, %s1874_s22, %s1875_s23  }
  0x4d   :  { %s1828_s7 = scalar_lea.vmem %s118_s12, 2048  ;;  %p1833_p8 = scmp.lt.s32.totalorder %s118_s12, %s118_s12 }
  0x4e   :  { %p1829_p7 = scmp.ne.s32.totalorder %s118_s12, %s1828_s7  ;;  %p1834_p9 = scmp.lt.s32.totalorder %s1828_s7, %s1828_s7 }
  0x50   :  { %p1835_p10 = por %p1834_p9, %p1833_p8 }
  0x52   :  { %p1836_p11 = pnand %p1835_p10, %p1829_p7 }
  0x54   :  { %1839 = shalt.err (!%p1836_p11)
}
  0x55   :  { %123 = dma.hbm_to_vmem [thread:$0]  %s2046_s10, 2048, %s118_s12, [#allocation15], %s1874_s22, %s1874_s22, %s1875_s23  }
  0x56   :  { %1860 = dma.done.wait [#allocation3], 1024  }
  0x57   :  { %1861 = vsyncadd [#allocation3], 4294966272 }
  0x58   :  { %1862 = dma.done.wait [#allocation6], 3072  }
  0x59   :  { %1863 = vsyncadd [#allocation6], 4294964224 }
  0x5a   :  { %1864 = dma.done.wait [#allocation9], 4096  }
  0x5b   :  { %1865 = vsyncadd [#allocation9], 4294963200 }
  0x5c   :  { %1866 = dma.done.wait [#allocation12], 4096  }
  0x5d   :  { %1867 = vsyncadd [#allocation12], 4294963200 }
  0x5e   :  { %1868 = dma.done.wait [#allocation15], 2048  }
  0x5f   :  { %1869 = vsyncadd [#allocation15], 4294965248  ;;  %v1882_v0 = vmov 0   ;;  %v148_v1 = vld [vmem:[%s2036_s0] sm:$0xff]  ;;  %v171_v2 = vld [vmem:[#allocation2 + $0x38] sm:$0xff]  ;;  %v150_v21 = vlaneseq  ;;  %vm189_vm0 = vcmask 523264  }
  0x60   :  { %1663 = vset.pattern.permute.xlu0 %v1882_v0  ;;  %1381 = vmatprep.subr.mxu1 %v171_v2  ;;  %v361_v3 = vld [vmem:[#allocation7 + $0x38] sm:$0xff]  ;;  %v170_v4 = vld [vmem:[#allocation2 + $0x30] sm:$0xff]  ;;  %v149_v6 = vld [vmem:[%s2036_s0 + $0x8] sm:$0xff]  ;;  %v1883_v24 = vmov 0.0   ;;  %vm1884_vm3 = vmmov 0   ;;  %vm952_vm4 = vcmask 64512  }
  0x61   :  { %153 = vperm.xlu0 %1663, %v148_v1   ;;  %v360_v5 = vld [vmem:[#allocation7 + $0x30] sm:$0xff]  ;;  %1435 = vmatprep.subr.mxu0 %v361_v3  ;;  %v169_v7 = vld [vmem:[#allocation2 + $0x28] sm:$0xff]  ;;  %v168_v9 = vld [vmem:[#allocation2 + $0x20] sm:$0xff]  ;;  %v151_v22 = vand.u32 127, %v150_v21 }
  0x62   :  { %1382 = vmatpush3.msra.mxu1 %v171_v2  ;;  %1436 = vmatpush3.msra.mxu0 %v361_v3  ;;  %v359_v8 = vld [vmem:[#allocation7 + $0x28] sm:$0xff]  ;;  %v358_v10 = vld [vmem:[#allocation7 + $0x20] sm:$0xff]  ;;  %v167_v11 = vld [vmem:[#allocation2 + $0x18] sm:$0xff] }
  0x63   :  { %1383 = vmatprep.subr.mxu1 %v170_v4  ;;  %1437 = vmatprep.subr.mxu0 %v360_v5  ;;  %v357_v12 = vld [vmem:[#allocation7 + $0x18] sm:$0xff]  ;;  %v166_v13 = vld [vmem:[#allocation2 + $0x10] sm:$0xff]  ;;  %v165_v15 = vld [vmem:[#allocation2 + $0x8] sm:$0xff] }
  0x64   :  { %1384 = vmatpush3.msra.mxu1 %v170_v4  ;;  %1438 = vmatpush3.msra.mxu0 %v360_v5  ;;  %v356_v14 = vld [vmem:[#allocation7 + $0x10] sm:$0xff]  ;;  %v355_v16 = vld [vmem:[#allocation7 + $0x8] sm:$0xff]  ;;  %v164_v17 = vld [vmem:[#allocation2] sm:$0xff] }
  0x65   :  { %156 = vperm.xlu0 %1663, %v149_v6   ;;  %1385 = vmatprep.subr.mxu1 %v169_v7  ;;  %v354_v18 = vld [vmem:[#allocation7] sm:$0xff]  ;;  %v187_v19 = vld [vmem:[#allocation5 + $0x78] sm:$0xff]  ;;  %v186_v28 = vld [vmem:[#allocation5 + $0x70] sm:$0xff] }
  0x66   :  { %1439 = vmatprep.subr.mxu0 %v359_v8  ;;  %1386 = vmatpush3.msra.mxu1 %v169_v7  ;;  %v377_v20 = vld [vmem:[#allocation8 + $0x78] sm:$0xff]  ;;  %v376_v29 = vld [vmem:[#allocation8 + $0x70] sm:$0xff]  ;;  %v185_v30 = vld [vmem:[#allocation5 + $0x68] sm:$0xff] }
  0x67   :  { %1440 = vmatpush3.msra.mxu0 %v359_v8  ;;  %1387 = vmatprep.subr.mxu1 %v168_v9  ;;  %v375_v31 = vld [vmem:[#allocation8 + $0x68] sm:$0xff]  ;;  %v184_v32 = vld [vmem:[#allocation5 + $0x60] sm:$0xff]  ;;  %v183_v34 = vld [vmem:[#allocation5 + $0x58] sm:$0xff] }
  0x68   :  { %1441 = vmatprep.subr.mxu0 %v358_v10  ;;  %1388 = vmatpush3.msra.mxu1 %v168_v9  ;;  %v374_v33 = vld [vmem:[#allocation8 + $0x60] sm:$0xff]  ;;  %v373_v35 = vld [vmem:[#allocation8 + $0x58] sm:$0xff]  ;;  %v182_v36 = vld [vmem:[#allocation5 + $0x50] sm:$0xff] }
  0x69   :  { %1442 = vmatpush3.msra.mxu0 %v358_v10  ;;  %1389 = vmatprep.subr.mxu1 %v167_v11  ;;  %v372_v37 = vld [vmem:[#allocation8 + $0x50] sm:$0xff]  ;;  %v181_v38 = vld [vmem:[#allocation5 + $0x48] sm:$0xff]  ;;  %v180_v40 = vld [vmem:[#allocation5 + $0x40] sm:$0xff] }
  0x6a   :  { %1443 = vmatprep.subr.mxu0 %v357_v12  ;;  %1390 = vmatpush3.msra.mxu1 %v167_v11  ;;  %v371_v39 = vld [vmem:[#allocation8 + $0x48] sm:$0xff]  ;;  %v370_v41 = vld [vmem:[#allocation8 + $0x40] sm:$0xff]  ;;  %v179_v42 = vld [vmem:[#allocation5 + $0x38] sm:$0xff] }
  0x6b   :  { %1444 = vmatpush3.msra.mxu0 %v357_v12  ;;  %1391 = vmatprep.subr.mxu1 %v166_v13  ;;  %v369_v43 = vld [vmem:[#allocation8 + $0x38] sm:$0xff]  ;;  %v178_v44 = vld [vmem:[#allocation5 + $0x30] sm:$0xff]  ;;  %v177_v46 = vld [vmem:[#allocation5 + $0x28] sm:$0xff] }
  0x6c   :  { %1445 = vmatprep.subr.mxu0 %v356_v14  ;;  %1392 = vmatpush3.msra.mxu1 %v166_v13  ;;  %v368_v45 = vld [vmem:[#allocation8 + $0x30] sm:$0xff]  ;;  %v367_v47 = vld [vmem:[#allocation8 + $0x28] sm:$0xff]  ;;  %v176_v48 = vld [vmem:[#allocation5 + $0x20] sm:$0xff] }
  0x6d   :  { %1446 = vmatpush3.msra.mxu0 %v356_v14  ;;  %1393 = vmatprep.subr.mxu1 %v165_v15  ;;  %v366_v49 = vld [vmem:[#allocation8 + $0x20] sm:$0xff]  ;;  %v175_v50 = vld [vmem:[#allocation5 + $0x18] sm:$0xff]  ;;  %v174_v52 = vld [vmem:[#allocation5 + $0x10] sm:$0xff] }
  0x6e   :  { %1447 = vmatprep.subr.mxu0 %v355_v16  ;;  %1394 = vmatpush3.msra.mxu1 %v165_v15  ;;  %v365_v51 = vld [vmem:[#allocation8 + $0x18] sm:$0xff]  ;;  %v364_v53 = vld [vmem:[#allocation8 + $0x10] sm:$0xff]  ;;  %v173_v54 = vld [vmem:[#allocation5 + $0x8] sm:$0xff] }
  0x6f   :  { %1448 = vmatpush3.msra.mxu0 %v355_v16  ;;  %1395 = vmatprep.subr.mxu1 %v164_v17  ;;  %v363_v55 = vld [vmem:[#allocation8 + $0x8] sm:$0xff]  ;;  %v172_v56 = vld [vmem:[#allocation5] sm:$0xff]  ;;  %v552_v58 = vld [vmem:[#allocation10 + $0x78] sm:$0xff] }
  0x70   :  { %1449 = vmatprep.subr.mxu0 %v354_v18  ;;  %1396 = vmatpush3.msra.mxu1 %v164_v17  ;;  %v362_v57 = vld [vmem:[#allocation8] sm:$0xff]  ;;  %v643_v59 = vld [vmem:[#allocation11 + $0x78] sm:$0xff]  ;;  %v551_v0 = vld [vmem:[#allocation10 + $0x70] sm:$0xff] }
  0x71   :  { %1450 = vmatpush3.msra.mxu0 %v354_v18  ;;  %1400 = vmatprep.subr.mxu1 %v187_v19  ;;  %v642_v1 = vld [vmem:[#allocation11 + $0x70] sm:$0xff]  ;;  %v550_v2 = vld [vmem:[#allocation10 + $0x68] sm:$0xff]  ;;  %v549_v4 = vld [vmem:[#allocation10 + $0x60] sm:$0xff] }
  0x72   :  { %1454 = vmatprep.subr.mxu0 %v377_v20  ;;  %v641_v3 = vld [vmem:[#allocation11 + $0x68] sm:$0xff]  ;;  %v640_v5 = vld [vmem:[#allocation11 + $0x60] sm:$0xff]  ;;  %v548_v6 = vld [vmem:[#allocation10 + $0x58] sm:$0xff] }
  0x73   :  { %v639_v7 = vld [vmem:[#allocation11 + $0x58] sm:$0xff]  ;;  %v547_v8 = vld [vmem:[#allocation10 + $0x50] sm:$0xff]  ;;  %v546_v10 = vld [vmem:[#allocation10 + $0x48] sm:$0xff] }
  0x74   :  { %v638_v9 = vld [vmem:[#allocation11 + $0x50] sm:$0xff]  ;;  %v637_v11 = vld [vmem:[#allocation11 + $0x48] sm:$0xff]  ;;  %v545_v12 = vld [vmem:[#allocation10 + $0x40] sm:$0xff] }
  0x75   :  { %v636_v13 = vld [vmem:[#allocation11 + $0x40] sm:$0xff]  ;;  %v544_v14 = vld [vmem:[#allocation10 + $0x38] sm:$0xff]  ;;  %v543_v16 = vld [vmem:[#allocation10 + $0x30] sm:$0xff] }
  0x76   :  { %v635_v15 = vld [vmem:[#allocation11 + $0x38] sm:$0xff]  ;;  %v634_v17 = vld [vmem:[#allocation11 + $0x30] sm:$0xff]  ;;  %v542_v18 = vld [vmem:[#allocation10 + $0x28] sm:$0xff] }
  0x77   :  { %v632_v21 = vld [vmem:[#allocation11 + $0x20] sm:$0xff] }
  0xdc   :  { %v154_v23 = vpop.permute.xlu0 %153 }
  0xdd   :  { %vm158_vm1 = vcmp.eq.s32.totalorder %v151_v22, %v154_v23  ;;  %v631_v23 = vld [vmem:[#allocation11 + $0x18] sm:$0xff] }
  0xde   :  { %v1235_v25 = vsel %vm158_vm1, 1.0, %v1883_v24 }
  0xdf   :  { %1397 = vmatprep.mubr.msk.f32.mxu1 %vm189_vm0, %v1235_v25  ;;  %1451 = vmatprep.mubr.msk.f32.mxu0 %vm189_vm0, %v1235_v25  ;;  %v539_v25 = vld [vmem:[#allocation10 + $0x10] sm:$0xff] }
  0xe0   :  { %v157_v26 = vpop.permute.xlu0 %156 }
  0xe1   :  { %vm159_vm2 = vcmp.eq.s32.totalorder %v151_v22, %v157_v26  ;;  %v540_v22 = vld [vmem:[#allocation10 + $0x18] sm:$0xff]  ;;  %v630_v26 = vld [vmem:[#allocation11 + $0x10] sm:$0xff] }
  0xe2   :  { %v1236_v27 = vsel %vm159_vm2, 1.0, %v1883_v24 }
  0xe3   :  { %1398 = vmatmul.mubr.msk.f32.vlgmr.msra.gmra.mxu1 %vm189_vm0, %v1236_v27  ;;  %1452 = vmatmul.mubr.msk.f32.vlgmr.msra.gmra.mxu0 %vm189_vm0, %v1236_v27  ;;  %v538_v27 = vld [vmem:[#allocation10 + $0x8] sm:$0xff] }
  0xe4   :  { %1401 = vmatpush3.msra.mxu1 %v187_v19  ;;  %1455 = vmatpush3.msra.mxu0 %v377_v20  ;;  %v633_v19 = vld [vmem:[#allocation11 + $0x28] sm:$0xff]  ;;  %v541_v20 = vld [vmem:[#allocation10 + $0x20] sm:$0xff] }
  0xe5   :  { %1402 = vmatprep.subr.mxu1 %v186_v28  ;;  %1456 = vmatprep.subr.mxu0 %v376_v29 }
  0xe6   :  { %1403 = vmatpush3.msra.mxu1 %v186_v28  ;;  %1457 = vmatpush3.msra.mxu0 %v376_v29  ;;  %v629_v28 = vld [vmem:[#allocation11 + $0x8] sm:$0xff]  ;;  %v537_v29 = vld [vmem:[#allocation10] sm:$0xff] }
  0xe7   :  { %1404 = vmatprep.subr.mxu1 %v185_v30  ;;  %1458 = vmatprep.subr.mxu0 %v375_v31 }
  0xe8   :  { %1405 = vmatpush3.msra.mxu1 %v185_v30  ;;  %1459 = vmatpush3.msra.mxu0 %v375_v31  ;;  %v628_v30 = vld [vmem:[#allocation11] sm:$0xff]  ;;  %v734_v31 = vld [vmem:[#allocation13 + $0x78] sm:$0xff] }
  0xe9   :  { %1406 = vmatprep.subr.mxu1 %v184_v32  ;;  %1460 = vmatprep.subr.mxu0 %v374_v33 }
  0xea   :  { %1407 = vmatpush3.msra.mxu1 %v184_v32  ;;  %1461 = vmatpush3.msra.mxu0 %v374_v33  ;;  %v1239_v32 = vld [vmem:[%s2039_s3] ss:$0 sm:$0xff]  ;;  %s1885_s3 = smov [#allocation16]  }
  0xeb   :  { %1408 = vmatprep.subr.mxu1 %v183_v34  ;;  %1462 = vmatprep.subr.mxu0 %v373_v35 }
  0xec   :  { %1409 = vmatpush3.msra.mxu1 %v183_v34  ;;  %1463 = vmatpush3.msra.mxu0 %v373_v35  ;;  %v1242_v35 = vld [vmem:[%s2042_s6] ss:$0 sm:$0xff]  ;;  %s1219_s6 = sshll.u32 %s1885_s3, 4  ;;  %s1220_s6 = int_to_ptr.vmem [resolvable:$true] %s1219_s6 }
  0xed   :  { %1410 = vmatprep.subr.mxu1 %v182_v36  ;;  %1464 = vmatprep.subr.mxu0 %v372_v37  ;;  %s1840_s20 = scalar_lea.vmem %s1220_s6, 256  ;;  %p1845_p13 = scmp.lt.s32.totalorder %s1220_s6, %s1220_s6 }
  0xee   :  { %1411 = vmatpush3.msra.mxu1 %v182_v36  ;;  %1465 = vmatpush3.msra.mxu0 %v372_v37  ;;  %p1841_p12 = scmp.ne.s32.totalorder %s1220_s6, %s1840_s20  ;;  %p1846_p0 = scmp.lt.s32.totalorder %s1840_s20, %s1840_s20 }
  0xef   :  { %1412 = vmatprep.subr.mxu1 %v181_v38  ;;  %1466 = vmatprep.subr.mxu0 %v371_v39 }
  0xf0   :  { %1413 = vmatpush3.msra.mxu1 %v181_v38  ;;  %1467 = vmatpush3.msra.mxu0 %v371_v39  ;;  %p1847_p1 = por %p1846_p0, %p1845_p13 }
  0xf1   :  { %1414 = vmatprep.subr.mxu1 %v180_v40  ;;  %1468 = vmatprep.subr.mxu0 %v370_v41 }
  0xf2   :  { %1415 = vmatpush3.msra.mxu1 %v180_v40  ;;  %1469 = vmatpush3.msra.mxu0 %v370_v41  ;;  %p1848_p2 = pnand %p1847_p1, %p1841_p12 }
  0xf3   :  { %1416 = vmatprep.subr.mxu1 %v179_v42  ;;  %1470 = vmatprep.subr.mxu0 %v369_v43 }
  0xf4   :  { %1417 = vmatpush3.msra.mxu1 %v179_v42  ;;  %1471 = vmatpush3.msra.mxu0 %v369_v43 }
  0xf5   :  { %1418 = vmatprep.subr.mxu1 %v178_v44  ;;  %1472 = vmatprep.subr.mxu0 %v368_v45 }
  0xf6   :  { %1419 = vmatpush3.msra.mxu1 %v178_v44  ;;  %1473 = vmatpush3.msra.mxu0 %v368_v45 }
  0xf7   :  { %1420 = vmatprep.subr.mxu1 %v177_v46  ;;  %1474 = vmatprep.subr.mxu0 %v367_v47 }
  0xf8   :  { %1421 = vmatpush3.msra.mxu1 %v177_v46  ;;  %1475 = vmatpush3.msra.mxu0 %v367_v47  ;;  %v733_v46 = vld [vmem:[#allocation13 + $0x70] sm:$0xff]  ;;  %v732_v47 = vld [vmem:[#allocation13 + $0x68] sm:$0xff] }
  0xf9   :  { %1422 = vmatprep.subr.mxu1 %v176_v48  ;;  %1476 = vmatprep.subr.mxu0 %v366_v49 }
  0xfa   :  { %1423 = vmatpush3.msra.mxu1 %v176_v48  ;;  %1477 = vmatpush3.msra.mxu0 %v366_v49  ;;  %v731_v48 = vld [vmem:[#allocation13 + $0x60] sm:$0xff]  ;;  %v730_v49 = vld [vmem:[#allocation13 + $0x58] sm:$0xff] }
  0xfb   :  { %1424 = vmatprep.subr.mxu1 %v175_v50  ;;  %1478 = vmatprep.subr.mxu0 %v365_v51 }
  0xfc   :  { %1425 = vmatpush3.msra.mxu1 %v175_v50  ;;  %1479 = vmatpush3.msra.mxu0 %v365_v51  ;;  %v729_v50 = vld [vmem:[#allocation13 + $0x50] sm:$0xff]  ;;  %v728_v51 = vld [vmem:[#allocation13 + $0x48] sm:$0xff] }
  0xfd   :  { %1426 = vmatprep.subr.mxu1 %v174_v52  ;;  %1480 = vmatprep.subr.mxu0 %v364_v53 }
  0xfe   :  { %1427 = vmatpush3.msra.mxu1 %v174_v52  ;;  %1481 = vmatpush3.msra.mxu0 %v364_v53  ;;  %v727_v52 = vld [vmem:[#allocation13 + $0x40] sm:$0xff]  ;;  %v726_v53 = vld [vmem:[#allocation13 + $0x38] sm:$0xff] }
  0xff   :  { %1428 = vmatprep.subr.mxu1 %v173_v54  ;;  %1482 = vmatprep.subr.mxu0 %v363_v55 }
 0x100   :  { %1429 = vmatpush3.msra.mxu1 %v173_v54  ;;  %1483 = vmatpush3.msra.mxu0 %v363_v55  ;;  %v725_v54 = vld [vmem:[#allocation13 + $0x30] sm:$0xff]  ;;  %v724_v55 = vld [vmem:[#allocation13 + $0x28] sm:$0xff] }
 0x101   :  { %1430 = vmatprep.subr.mxu1 %v172_v56  ;;  %1484 = vmatprep.subr.mxu0 %v362_v57 }
 0x102   :  { %1431 = vmatpush3.msra.mxu1 %v172_v56  ;;  %1485 = vmatpush3.msra.mxu0 %v362_v57  ;;  %v723_v56 = vld [vmem:[#allocation13 + $0x20] sm:$0xff]  ;;  %v722_v57 = vld [vmem:[#allocation13 + $0x18] sm:$0xff] }
 0x103   :  { %1489 = vmatprep.subr.mxu1 %v552_v58  ;;  %1524 = vmatprep.subr.mxu0 %v643_v59 }
 0x1a3   :  { %v1399_v60 = vpop.f32.mrf.mxu1  ;;  %v1453_v61 = vpop.f32.mrf.mxu0 }
 0x1a5   :  { %v262_v62 = vpop.f32.mrf.mxu1  ;;  %v445_v63 = vpop.f32.mrf.mxu0 }
 0x1a6   :  { %1432 = vmatprep.mubr.f32.mxu1 %v262_v62  ;;  %1486 = vmatprep.mubr.f32.mxu0 %v445_v63 }
 0x1a7   :  { %1433 = vmatmul.mubr.f32.vlgmr.msra.gmra.mxu1 %v1399_v60  ;;  %1487 = vmatmul.mubr.f32.vlgmr.msra.gmra.mxu0 %v1453_v61  ;;  %v719_v60 = vld [vmem:[#allocation13] sm:$0xff] }
 0x1a8   :  { %1490 = vmatpush3.msra.mxu1 %v552_v58  ;;  %1525 = vmatpush3.msra.mxu0 %v643_v59  ;;  %v721_v58 = vld [vmem:[#allocation13 + $0x10] sm:$0xff]  ;;  %v720_v59 = vld [vmem:[#allocation13 + $0x8] sm:$0xff] }
 0x1a9   :  { %1491 = vmatprep.subr.mxu1 %v551_v0  ;;  %1526 = vmatprep.subr.mxu0 %v642_v1 }
 0x1aa   :  { %1492 = vmatpush3.msra.mxu1 %v551_v0  ;;  %1527 = vmatpush3.msra.mxu0 %v642_v1 }
 0x1ab   :  { %1493 = vmatprep.subr.mxu1 %v550_v2  ;;  %1528 = vmatprep.subr.mxu0 %v641_v3 }
 0x1ac   :  { %1494 = vmatpush3.msra.mxu1 %v550_v2  ;;  %1529 = vmatpush3.msra.mxu0 %v641_v3 }
 0x1ad   :  { %1495 = vmatprep.subr.mxu1 %v549_v4  ;;  %1530 = vmatprep.subr.mxu0 %v640_v5 }
 0x1ae   :  { %1496 = vmatpush3.msra.mxu1 %v549_v4  ;;  %1531 = vmatpush3.msra.mxu0 %v640_v5 }
 0x1af   :  { %1497 = vmatprep.subr.mxu1 %v548_v6  ;;  %1532 = vmatprep.subr.mxu0 %v639_v7 }
 0x1b0   :  { %1498 = vmatpush3.msra.mxu1 %v548_v6  ;;  %1533 = vmatpush3.msra.mxu0 %v639_v7 }
 0x1b1   :  { %1499 = vmatprep.subr.mxu1 %v547_v8  ;;  %1534 = vmatprep.subr.mxu0 %v638_v9 }
 0x1b2   :  { %1500 = vmatpush3.msra.mxu1 %v547_v8  ;;  %1535 = vmatpush3.msra.mxu0 %v638_v9 }
 0x1b3   :  { %1501 = vmatprep.subr.mxu1 %v546_v10  ;;  %1536 = vmatprep.subr.mxu0 %v637_v11 }
 0x1b4   :  { %1502 = vmatpush3.msra.mxu1 %v546_v10  ;;  %1537 = vmatpush3.msra.mxu0 %v637_v11 }
 0x1b5   :  { %1503 = vmatprep.subr.mxu1 %v545_v12  ;;  %1538 = vmatprep.subr.mxu0 %v636_v13 }
 0x1b6   :  { %1504 = vmatpush3.msra.mxu1 %v545_v12  ;;  %1539 = vmatpush3.msra.mxu0 %v636_v13 }
 0x1b7   :  { %1505 = vmatprep.subr.mxu1 %v544_v14  ;;  %1540 = vmatprep.subr.mxu0 %v635_v15 }
 0x1b8   :  { %1506 = vmatpush3.msra.mxu1 %v544_v14  ;;  %1541 = vmatpush3.msra.mxu0 %v635_v15 }
 0x1b9   :  { %1507 = vmatprep.subr.mxu1 %v543_v16  ;;  %1542 = vmatprep.subr.mxu0 %v634_v17 }
 0x1ba   :  { %1508 = vmatpush3.msra.mxu1 %v543_v16  ;;  %1543 = vmatpush3.msra.mxu0 %v634_v17 }
 0x1bb   :  { %1509 = vmatprep.subr.mxu1 %v542_v18  ;;  %1544 = vmatprep.subr.mxu0 %v633_v19 }
 0x1bc   :  { %1510 = vmatpush3.msra.mxu1 %v542_v18  ;;  %1545 = vmatpush3.msra.mxu0 %v633_v19 }
 0x1bd   :  { %1511 = vmatprep.subr.mxu1 %v541_v20  ;;  %1546 = vmatprep.subr.mxu0 %v632_v21 }
 0x1be   :  { %1512 = vmatpush3.msra.mxu1 %v541_v20  ;;  %1547 = vmatpush3.msra.mxu0 %v632_v21  ;;  %v1136_v20 = vld [vmem:[#allocation14 + $0x78] sm:$0xff] }
 0x1bf   :  { %1513 = vmatprep.subr.mxu1 %v540_v22  ;;  %1548 = vmatprep.subr.mxu0 %v631_v23 }
 0x1c0   :  { %1514 = vmatpush3.msra.mxu1 %v540_v22  ;;  %1549 = vmatpush3.msra.mxu0 %v631_v23 }
 0x1c1   :  { %1515 = vmatprep.subr.mxu1 %v539_v25  ;;  %1550 = vmatprep.subr.mxu0 %v630_v26 }
 0x1c2   :  { %1516 = vmatpush3.msra.mxu1 %v539_v25  ;;  %1551 = vmatpush3.msra.mxu0 %v630_v26  ;;  %v1135_v26 = vld [vmem:[#allocation14 + $0x70] sm:$0xff] }
 0x1c3   :  { %1517 = vmatprep.subr.mxu1 %v538_v27  ;;  %1552 = vmatprep.subr.mxu0 %v629_v28 }
 0x1c4   :  { %1518 = vmatpush3.msra.mxu1 %v538_v27  ;;  %1553 = vmatpush3.msra.mxu0 %v629_v28  ;;  %v1134_v28 = vld [vmem:[#allocation14 + $0x68] sm:$0xff] }
 0x1c5   :  { %1519 = vmatprep.subr.mxu1 %v537_v29  ;;  %1554 = vmatprep.subr.mxu0 %v628_v30 }
 0x1c6   :  { %1520 = vmatpush3.msra.mxu1 %v537_v29  ;;  %1555 = vmatpush3.msra.mxu0 %v628_v30  ;;  %v1133_v30 = vld [vmem:[#allocation14 + $0x60] sm:$0xff] }
 0x1c7   :  { %1559 = vmatprep.subr.mxu1 %v734_v31  ;;  %1594 = vmatprep.subr.mxu0 %v1883_v24 }
 0x267   :  { %v1434_v33 = vpop.f32.mrf.mxu1  ;;  %v1488_v34 = vpop.f32.mrf.mxu0 }
 0x268   :  { %v349_v36 = vadd.f32 %v1434_v33, %v1239_v32  ;;  %v532_v39 = vadd.f32 %v1488_v34, %v1242_v35  ;;  %v1130_v33 = vld [vmem:[#allocation14 + $0x48] sm:$0xff]  ;;  %v1129_v34 = vld [vmem:[#allocation14 + $0x40] sm:$0xff] }
 0x269   :  { %v343_v37 = vpop.f32.mrf.mxu1  ;;  %v526_v38 = vpop.f32.mrf.mxu0 }
 0x26a   :  { %v344_v40 = vadd.f32 %v1239_v32, %v343_v37  ;;  %v527_v41 = vadd.f32 %v1242_v35, %v526_v38  ;;  %1664 = vtanh.f32 %v349_v36  ;;  %v1131_v32 = vld [vmem:[#allocation14 + $0x50] sm:$0xff]  ;;  %v1128_v35 = vld [vmem:[#allocation14 + $0x38] sm:$0xff]  ;;  %v1126_v37 = vld [vmem:[#allocation14 + $0x28] sm:$0xff] }
 0x26b   :  { %v1127_v36 = vld [vmem:[#allocation14 + $0x30] sm:$0xff]  ;;  %v1125_v38 = vld [vmem:[#allocation14 + $0x20] sm:$0xff] }
 0x26c   :  { %1666 = vtanh.f32 %v344_v40  ;;  %v1123_v40 = vld [vmem:[#allocation14 + $0x10] sm:$0xff] }
 0x26d   :  { %1668 = vtanh.f32 %v527_v41  ;;  %v1122_v41 = vld [vmem:[#allocation14 + $0x8] sm:$0xff] }
 0x26e   :  { %1670 = vtanh.f32 %v532_v39  ;;  %v1124_v39 = vld [vmem:[#allocation14 + $0x18] sm:$0xff] }
 0x277   :  { %v1665_v42 = vpop.eup %1664 }
 0x279   :  { %v1667_v43 = vpop.eup %1666 }
 0x27a   :  { %v2009_v44 = vpop.eup %1668  ;;  %1556 = vmatprep.mubr.f32.mxu0 %v1667_v43 }
 0x27b   :  { %v2011_v45 = vpop.eup %1670  ;;  %1521 = vmatprep.mubr.f32.mxu1 %v2009_v44  ;;  %1557 = vmatmul.mubr.f32.vlgmr.msra.gmra.mxu0 %v1665_v42 }
 0x27c   :  { %1522 = vmatmul.mubr.f32.vlgmr.msra.gmra.mxu1 %v2011_v45  ;;  %1596 = vmatprep.mubr.msk.f32.mxu0 %vm1884_vm3, %v1883_v24 }
 0x27d   :  { %1560 = vmatpush3.msra.mxu1 %v734_v31  ;;  %1591 = vmatprep.mubr.f32.mxu1 %v1667_v43  ;;  %v1132_v31 = vld [vmem:[#allocation14 + $0x58] sm:$0xff] }
 0x27e   :  { %1561 = vmatprep.subr.mxu1 %v733_v46 }
 0x27f   :  { %1562 = vmatpush3.msra.mxu1 %v733_v46 }
 0x280   :  { %1563 = vmatprep.subr.mxu1 %v732_v47 }
 0x281   :  { %1564 = vmatpush3.msra.mxu1 %v732_v47 }
 0x282   :  { %1565 = vmatprep.subr.mxu1 %v731_v48 }
 0x283   :  { %1566 = vmatpush3.msra.mxu1 %v731_v48 }
 0x284   :  { %1567 = vmatprep.subr.mxu1 %v730_v49 }
 0x285   :  { %1568 = vmatpush3.msra.mxu1 %v730_v49 }
 0x286   :  { %1569 = vmatprep.subr.mxu1 %v729_v50 }
 0x287   :  { %1570 = vmatpush3.msra.mxu1 %v729_v50 }
 0x288   :  { %1571 = vmatprep.subr.mxu1 %v728_v51 }
 0x289   :  { %1572 = vmatpush3.msra.mxu1 %v728_v51 }
 0x28a   :  { %1573 = vmatprep.subr.mxu1 %v727_v52 }
 0x28b   :  { %1574 = vmatpush3.msra.mxu1 %v727_v52 }
 0x28c   :  { %1575 = vmatprep.subr.mxu1 %v726_v53 }
 0x28d   :  { %1576 = vmatpush3.msra.mxu1 %v726_v53 }
 0x28e   :  { %1577 = vmatprep.subr.mxu1 %v725_v54 }
 0x28f   :  { %1578 = vmatpush3.msra.mxu1 %v725_v54 }
 0x290   :  { %1579 = vmatprep.subr.mxu1 %v724_v55 }
 0x291   :  { %1580 = vmatpush3.msra.mxu1 %v724_v55 }
 0x292   :  { %1581 = vmatprep.subr.mxu1 %v723_v56 }
 0x293   :  { %1582 = vmatpush3.msra.mxu1 %v723_v56 }
 0x294   :  { %1583 = vmatprep.subr.mxu1 %v722_v57 }
 0x295   :  { %1584 = vmatpush3.msra.mxu1 %v722_v57 }
 0x296   :  { %1585 = vmatprep.subr.mxu1 %v721_v58 }
 0x297   :  { %1586 = vmatpush3.msra.mxu1 %v721_v58 }
 0x298   :  { %1587 = vmatprep.subr.mxu1 %v720_v59 }
 0x299   :  { %1588 = vmatpush3.msra.mxu1 %v720_v59 }
 0x29a   :  { %1589 = vmatprep.subr.mxu1 %v719_v60 }
 0x29b   :  { %1590 = vmatpush3.msra.mxu1 %v719_v60 }
 0x29c   :  { %1592 = vmatmul.mubr.f32.vlgmr.msra.gmra.mxu1 %v1665_v42  ;;  %1599 = vmatprep.subr.mxu1 %v1883_v24  ;;  %v1121_v42 = vld [vmem:[#allocation14] sm:$0xff] }
 0x29d   :  { %1601 = vmatprep.mubr.msk.f32.mxu1 %vm1884_vm3, %v1883_v24 }
 0x33b   :  { %v1558_v61 = vpop.f32.mrf.mxu0 }
 0x33c   :  { %v1523_v62 = vpop.f32.mrf.mxu1  ;;  %1600 = vmatpush3.xpose.msra.mxu1 %v1558_v61 }
 0x33d   :  { %v710_v63 = vpop.f32.mrf.mxu0  ;;  %1609 = vmatprep.subr.mxu1 %v1883_v24 }
 0x33e   :  { %1595 = vmatpush3.xpose.msra.mxu0 %v710_v63  ;;  %v619_v0 = vpop.f32.mrf.mxu1 }
 0x33f   :  { %1602 = vmatmul.mubr.f32.vlgmr.msra.gmra.mxu1 %v1523_v62  ;;  %1604 = vmatprep.subr.mxu0 %v1883_v24 }
 0x340   :  { %1611 = vmatprep.mubr.msk.f32.mxu1 %vm1884_vm3, %v1883_v24 }
 0x341   :  { %1597 = vmatmul.mubr.f32.vlgmr.msra.gmra.mxu0 %v619_v0 }
 0x342   :  { %1606 = vmatprep.mubr.msk.f32.mxu0 %vm1884_vm3, %v1883_v24 }
 0x35c   :  { %v1593_v1 = vpop.f32.mrf.mxu1 }
 0x35d   :  { %1610 = vmatpush3.msra.mxu1 %v1593_v1 }
 0x35e   :  { %v801_v2 = vpop.f32.mrf.mxu1 }
 0x35f   :  { %1605 = vmatpush3.msra.mxu0 %v801_v2 }
 0x360   :  { %1614 = vmatprep.subr.mxu0 %v1136_v20 }
 0x3ff   :  { %v946_v3 = vpop.f32.mrf.mxu1 }
 0x400   :  { %v951_v8 = vmul.f32 0.088388346, %v946_v3 }
 0x401   :  { %v876_v4 = vpop.f32.mrf.mxu0  ;;  %v1603_v5 = vpop.f32.mrf.mxu1 }
 0x402   :  { %v950_v6 = vmul.f32 0.088388346, %v876_v4  ;;  %v956_v10 = vsel %vm952_vm4, %v951_v8, -inf }
 0x403   :  { %v1598_v7 = vpop.f32.mrf.mxu0 }
 0x404   :  { %v953_v9 = vsel %vm952_vm4, %v950_v6, -inf }
 0x405   :  { %954 = vmax.xlane.f32.xlu1 %v953_v9 }
 0x409   :  { %957 = vmax.xlane.f32.xlu1 %v956_v10 }
 0x48e   :  { %v955_v11 = vpop.xlane.xlu1 %954 }
 0x48f   :  { %v959_v12 = vsub.f32 %v950_v6, %v955_v11 }
 0x491   :  { %v961_v24 = vmul.f32 1.442695, %v959_v12 }
 0x492   :  { %v958_v13 = vpop.xlane.xlu1 %957 }
 0x493   :  { %1672 = vpow2.f32 %v961_v24  ;;  %v960_v14 = vsub.f32 %v951_v8, %v958_v13 }
 0x495   :  { %v963_v15 = vmul.f32 1.442695, %v960_v14 }
 0x497   :  { %1674 = vpow2.f32 %v963_v15 }
 0x4a0   :  { %v1673_v16 = vpop.eup %1672 }
 0x4a1   :  { %v965_v17 = vsel %vm952_vm4, %v1673_v16, 0.0 }
 0x4a2   :  { %966 = vadd.xlane.f32.xlu0 %v965_v17 }
 0x4a4   :  { %v1675_v18 = vpop.eup %1674 }
 0x4a5   :  { %v968_v19 = vsel %vm952_vm4, %v1675_v18, 0.0 }
 0x4a6   :  { %969 = vadd.xlane.f32.xlu1 %v968_v19 }
 0x52b   :  { %v967_v21 = vpop.xlane.xlu0 %966 }
 0x52c   :  { %1676 = vrcp.f32 %v967_v21 }
 0x52f   :  { %v970_v22 = vpop.xlane.xlu1 %969 }
 0x530   :  { %1678 = vrcp.f32 %v970_v22 }
 0x539   :  { %v1677_v23 = vpop.eup %1676 }
 0x53a   :  { %v973_v25 = vmul.f32 %v1677_v23, %v1673_v16 }
 0x53c   :  { %1607 = vmatmul.mubr.msk.f32.vlgmr.msra.gmra.mxu0 %vm952_vm4, %v973_v25 }
 0x53d   :  { %v1679_v27 = vpop.eup %1678  ;;  %1615 = vmatpush3.msra.mxu0 %v1136_v20 }
 0x53e   :  { %v974_v29 = vmul.f32 %v1679_v27, %v1675_v18  ;;  %1616 = vmatprep.subr.mxu0 %v1135_v26 }
 0x53f   :  { %1617 = vmatpush3.msra.mxu0 %v1135_v26 }
 0x540   :  { %1612 = vmatmul.mubr.msk.f32.vlgmr.msra.gmra.mxu1 %vm952_vm4, %v974_v29  ;;  %1618 = vmatprep.subr.mxu0 %v1134_v28 }
 0x541   :  { %1619 = vmatpush3.msra.mxu0 %v1134_v28 }
 0x542   :  { %1620 = vmatprep.subr.mxu0 %v1133_v30 }
 0x543   :  { %1621 = vmatpush3.msra.mxu0 %v1133_v30 }
 0x544   :  { %1622 = vmatprep.subr.mxu0 %v1132_v31 }
 0x545   :  { %1623 = vmatpush3.msra.mxu0 %v1132_v31 }
 0x546   :  { %1624 = vmatprep.subr.mxu0 %v1131_v32 }
 0x547   :  { %1625 = vmatpush3.msra.mxu0 %v1131_v32 }
 0x548   :  { %1626 = vmatprep.subr.mxu0 %v1130_v33 }
 0x549   :  { %1627 = vmatpush3.msra.mxu0 %v1130_v33 }
 0x54a   :  { %1628 = vmatprep.subr.mxu0 %v1129_v34 }
 0x54b   :  { %1629 = vmatpush3.msra.mxu0 %v1129_v34 }
 0x54c   :  { %1630 = vmatprep.subr.mxu0 %v1128_v35 }
 0x54d   :  { %1631 = vmatpush3.msra.mxu0 %v1128_v35 }
 0x54e   :  { %1632 = vmatprep.subr.mxu0 %v1127_v36 }
 0x54f   :  { %1633 = vmatpush3.msra.mxu0 %v1127_v36 }
 0x550   :  { %1634 = vmatprep.subr.mxu0 %v1126_v37 }
 0x551   :  { %1635 = vmatpush3.msra.mxu0 %v1126_v37 }
 0x552   :  { %1636 = vmatprep.subr.mxu0 %v1125_v38 }
 0x553   :  { %1637 = vmatpush3.msra.mxu0 %v1125_v38 }
 0x554   :  { %1638 = vmatprep.subr.mxu0 %v1124_v39 }
 0x555   :  { %1639 = vmatpush3.msra.mxu0 %v1124_v39 }
 0x556   :  { %1640 = vmatprep.subr.mxu0 %v1123_v40 }
 0x557   :  { %1641 = vmatpush3.msra.mxu0 %v1123_v40 }
 0x558   :  { %1642 = vmatprep.subr.mxu0 %v1122_v41 }
 0x559   :  { %1643 = vmatpush3.msra.mxu0 %v1122_v41 }
 0x55a   :  { %1644 = vmatprep.subr.mxu0 %v1121_v42 }
 0x55b   :  { %1645 = vmatpush3.msra.mxu0 %v1121_v42 }
 0x5fc   :  { %v1044_v43 = vpop.f32.mrf.mxu0 }
 0x5fd   :  { %1646 = vmatprep.mubr.f32.mxu0 %v1044_v43 }
 0x5fe   :  { %v1608_v46 = vpop.f32.mrf.mxu0 }
 0x600   :  { %v1117_v47 = vpop.f32.mrf.mxu1 }
 0x601   :  { %1647 = vmatmul.mubr.f32.vlgmr.msra.gmra.mxu0 %v1117_v47 }
 0x602   :  { %v1613_v48 = vpop.f32.mrf.mxu1 }
 0x6c1   :  { %v1648_v49 = vpop.f32.mrf.mxu0 }
 0x6c2   :  { %v1209_v50 = vadd.f32 %v2011_v45, %v1648_v49 }
 0x6c3   :  { %v1203_v51 = vpop.f32.mrf.mxu0 }
 0x6c4   :  { %1213 = vst [vmem:[#allocation16 + $0x8] sm:$0xff] %v1209_v50  ;;  %v1204_v52 = vadd.f32 %v2009_v44, %v1203_v51 }
 0x6c6   :  { %1212 = vst [vmem:[#allocation16] sm:$0xff] %v1204_v52 }
 0x6c7   :  { %1851 = shalt.err (!%p1848_p2)
}
 0x6c8   :  { %1225 = dma.vmem_to_hbm [thread:$0]  %s1220_s6, 256, %s2047_s11, [#allocation4], %s1874_s22, %s1874_s22, %s1875_s23  }
 0x6c9   :  { %1870 = dma.done.wait [#allocation4], 256  }
 0x6ca   :  { %1871 = vsyncadd [#allocation4], 4294967040 }
 0x6cb   :  { %1229 = vsyncpa [#allocation3], 1 }
 0x6cc   :  { %1230 = vsyncpa [#allocation6], 1 }
 0x6cd   :  { %1231 = vsyncpa [#allocation9], 1 }
 0x6ce   :  { %1232 = vsyncpa [#allocation12], 1 }
 0x6cf   :  { %1233 = vsyncpa [#allocation15], 1 }
 0x6d0   :  { %1234 = vsyncpa [#allocation4], 1 }

</bundles_post_ra>
